<compile_context>
chip_gen: v6e
topology: v6e:2x2x1
jax: 0.10.0
libtpu: 0.0.40
codegen_flags: <defaults>
</compile_context>

<pallas_src>
import functools

import jax
import jax.numpy as jnp
from jax.experimental import pallas as pl
from jax.experimental.pallas import tpu as pltpu

LN_EPS = 1e-5  # torch.nn.LayerNorm default


# ----------------------------------------------------------------------------
# Hardware-aware helpers
# ----------------------------------------------------------------------------
@functools.lru_cache(maxsize=None)
def _vmem_limit_bytes():
    """~75% of physical VMEM; conservative 48 MiB fallback (safe on v7x)."""
    try:
        info = pltpu.get_tpu_info()
        cap = getattr(info, "vmem_capacity_bytes", None)
        if cap:
            return int(cap) * 3 // 4
    except Exception:
        pass
    return 48 * 1024 * 1024


def _compiler_params(dimension_semantics):
    return pltpu.CompilerParams(
        dimension_semantics=dimension_semantics,
        vmem_limit_bytes=_vmem_limit_bytes())


_BUFFERED_SINGLE_OK = None


def _buffered_single_supported():
    """Probe whether pipeline_mode=pl.Buffered(1) is available on this build."""
    global _BUFFERED_SINGLE_OK
    if _BUFFERED_SINGLE_OK is None:
        try:
            def _probe(x_ref, o_ref):
                o_ref[...] = x_ref[...] + 1.0

            spec = pl.BlockSpec((8, 128), lambda i: (0, 0),
                                pipeline_mode=pl.Buffered(1))
            out = pl.pallas_call(
                _probe,
                out_shape=jax.ShapeDtypeStruct((8, 128), jnp.float32),
                grid=(2,),
                in_specs=[spec],
                out_specs=pl.BlockSpec((8, 128), lambda i: (0, 0)),
            )(jnp.zeros((8, 128), jnp.float32))
            jax.block_until_ready(out)
            _BUFFERED_SINGLE_OK = True
        except Exception:
            _BUFFERED_SINGLE_OK = False
    return _BUFFERED_SINGLE_OK


def _const_spec(shape):
    """BlockSpec for a constant-index operand; single-buffered if supported."""
    idx = lambda *_: (0,) * len(shape)
    if _buffered_single_supported():
        return pl.BlockSpec(shape, idx, pipeline_mode=pl.Buffered(1))
    return pl.BlockSpec(shape, idx)


def _pick_bt(batch, seq, dim, hidden, num_heads):
    """Largest batch tile fitting the VMEM budget; prefer >=2 grid steps."""
    budget = int(_vmem_limit_bytes() * 0.6)

    def est(bt):
        t = bt * seq
        layer_w = 2 * 2 * (4 * dim * dim + 2 * dim * hidden)   # 2 bufs, bf16
        act = (2 * 2 * 2 * bt * seq * dim                       # x in/out blocks
               + 4 * bt * seq * dim                             # f32 residual
               + (4 + 2) * bt * num_heads * seq * seq           # scores + probs
               + 3 * 4 * t * dim                                # q, k, v (f32)
               + 4 * t * hidden)                                # mlp hidden (f32)
        return layer_w + act

    divisors = [bt for bt in range(1, batch + 1) if batch % bt == 0]
    fits = [bt for bt in divisors if est(bt) <= budget]
    if not fits:
        return 1
    two_core = [bt for bt in fits if batch // bt >= 2]
    return max(two_core) if two_core else max(fits)


# ----------------------------------------------------------------------------
# In-kernel helpers
# ----------------------------------------------------------------------------
def _layernorm(x, g, b):
    """LayerNorm over last axis (f32 math)."""
    mu = jnp.mean(x, axis=-1, keepdims=True)
    xc = x - mu
    var = jnp.mean(xc * xc, axis=-1, keepdims=True)
    return xc * jax.lax.rsqrt(var + LN_EPS) * g + b


# ----------------------------------------------------------------------------
# Pallas kernels
# ----------------------------------------------------------------------------
def linear_kernel(x_ref, w_ref, b_ref, o_ref):
    # x: (Bt, S, Din), w: (Din, Dout) bf16, b: (1, Dout) f32
    bt, s, din = x_ref.shape
    dout = w_ref.shape[-1]
    x = x_ref[...].astype(jnp.bfloat16).reshape(bt * s, din)
    y = jnp.dot(x, w_ref[...], preferred_element_type=jnp.float32) + b_ref[...]
    o_ref[...] = y.reshape(bt, s, dout).astype(o_ref.dtype)


def decoder_blocks_kernel(num_heads, use_tanh_gelu,
                          x_ref, pos_ref,
                          ln1_g_ref, ln1_b_ref,
                          wq_ref, wk_ref, wv_ref, bq_ref, bk_ref, bv_ref,
                          wo_ref, bo_ref,
                          ln2_g_ref, ln2_b_ref,
                          w1_ref, b1_ref, w2_ref, b2_ref,
                          o_ref, res_ref):
    """All pre-LN ViT blocks; grid = (batch_tile, layer).

    The f32 residual lives in `res_ref` (VMEM scratch) across the whole layer
    axis; bf16 matmul operands with f32 accumulation; LN / softmax / residual
    math in f32.
    """
    l = pl.program_id(1)
    num_layers = pl.num_programs(1)

    @pl.when(l == 0)
    def _():
        # Fused decoder_pos_embed add on layer 0.
        res_ref[...] = x_ref[...].astype(jnp.float32) + pos_ref[...]

    x = res_ref[...]                                    # (Bt, S, D) f32
    bt, s, d = x.shape
    h_heads = num_heads
    dh = d // h_heads
    t = bt * s

    # ---- multi-head self-attention ----
    xn = _layernorm(x, ln1_g_ref[0], ln1_b_ref[0]).astype(jnp.bfloat16)
    xn2 = xn.reshape(t, d)

    # 1/sqrt(dh) is pre-folded into wq / bq at parameter-prep time.
    q = jnp.dot(xn2, wq_ref[0], preferred_element_type=jnp.float32) + bq_ref[0]
    k = jnp.dot(xn2, wk_ref[0], preferred_element_type=jnp.float32) + bk_ref[0]
    v = jnp.dot(xn2, wv_ref[0], preferred_element_type=jnp.float32) + bv_ref[0]

    def to_heads(a):
        # (T, D) -> (H*Bt, S, dh): one reshape + one (t,h,d)->(h,t,d) transpose
        # instead of H lane slices + stack (removes O(H) VMEM copies).
        a = a.reshape(t, h_heads, dh)
        a = jnp.transpose(a, (1, 0, 2))                 # (H, T, dh)
        return a.reshape(h_heads * bt, s, dh).astype(jnp.bfloat16)

    qh, kh, vh = to_heads(q), to_heads(k), to_heads(v)
    sc = jnp.einsum('hqd,hkd->hqk', qh, kh,
                    preferred_element_type=jnp.float32)  # (H*Bt, S, S)
    sc = sc - jnp.max(sc, axis=-1, keepdims=True)
    p = jnp.exp(sc)
    p = p * pl.reciprocal(jnp.sum(p, axis=-1, keepdims=True), approx=True)
    o = jnp.einsum('hqk,hkd->hqd', p.astype(jnp.bfloat16), vh,
                   preferred_element_type=jnp.float32)   # (H*Bt, S, dh)

    o = o.reshape(h_heads, t, dh)
    o = jnp.transpose(o, (1, 0, 2)).reshape(t, d)        # back to (T, D)
    attn = (jnp.dot(o.astype(jnp.bfloat16), wo_ref[0],
                    preferred_element_type=jnp.float32) + bo_ref[0])
    x = x + attn.reshape(bt, s, d)

    # ---- MLP ----
    xn2 = _layernorm(x, ln2_g_ref[0], ln2_b_ref[0]).astype(jnp.bfloat16)
    hdn = (jnp.dot(xn2.reshape(t, d), w1_ref[0],
                   preferred_element_type=jnp.float32) + b1_ref[0])
    # exact erf GELU matches torch; tanh variant (EUP slot) behind a flag.
    hdn = jax.nn.gelu(hdn, approximate=use_tanh_gelu)
    hdn = (jnp.dot(hdn.astype(jnp.bfloat16), w2_ref[0],
                   preferred_element_type=jnp.float32) + b2_ref[0])
    x = x + hdn.reshape(bt, s, d)

    res_ref[...] = x

    @pl.when(l == num_layers - 1)
    def _():
        o_ref[...] = x.astype(o_ref.dtype)


def norm_pred_kernel(x_ref, g_ref, b_ref, w_ref, bias_ref, o_ref):
    # decoder_norm (LayerNorm, f32) + decoder_pred (bf16 matmul, f32 acc).
    bt, s, d = x_ref.shape
    p = o_ref.shape[-1]
    xn = _layernorm(x_ref[...].astype(jnp.float32), g_ref[...], b_ref[...])
    y = (jnp.dot(xn.reshape(bt * s, d).astype(jnp.bfloat16), w_ref[...],
                 preferred_element_type=jnp.float32) + bias_ref[...])
    o_ref[...] = y.reshape(bt, s, p).astype(o_ref.dtype)


# ----------------------------------------------------------------------------
# pallas_call wrappers
# ----------------------------------------------------------------------------
def pallas_linear(x, w, b, bt):
    B, S, Din = x.shape
    Dout = w.shape[1]
    return pl.pallas_call(
        linear_kernel,
        out_shape=jax.ShapeDtypeStruct((B, S, Dout), jnp.bfloat16),
        grid=(B // bt,),
        in_specs=[pl.BlockSpec((bt, S, Din), lambda i: (i, 0, 0)),
                  _const_spec((Din, Dout)),
                  _const_spec((1, Dout))],
        out_specs=pl.BlockSpec((bt, S, Dout), lambda i: (i, 0, 0)),
        compiler_params=_compiler_params(("parallel",)),
    )(x, w, b)


def pallas_decoder_blocks(x, pos, st, num_heads, bt, use_tanh_gelu=False):
    B, S, D = x.shape
    L = st["wq"].shape[0]
    Hm = st["w1"].shape[-1]

    def act_spec():
        return pl.BlockSpec((bt, S, D), lambda b, l: (b, 0, 0))

    def layer_spec(arr):
        zeros = (0,) * (arr.ndim - 1)
        return pl.BlockSpec((1,) + arr.shape[1:], lambda b, l: (l,) + zeros)

    operands = [x, pos,
                st["ln1_g"], st["ln1_b"],
                st["wq"], st["wk"], st["wv"],
                st["bq"], st["bk"], st["bv"],
                st["wo"], st["bo"],
                st["ln2_g"], st["ln2_b"],
                st["w1"], st["b1"], st["w2"], st["b2"]]
    in_specs = [act_spec(), _const_spec((1, S, D))] + \
               [layer_spec(a) for a in operands[2:]]

    return pl.pallas_call(
        functools.partial(decoder_blocks_kernel, num_heads, use_tanh_gelu),
        out_shape=jax.ShapeDtypeStruct((B, S, D), jnp.bfloat16),
        grid=(B // bt, L),
        in_specs=in_specs,
        out_specs=act_spec(),
        scratch_shapes=[pltpu.VMEM((bt, S, D), jnp.float32)],
        compiler_params=_compiler_params(("parallel", "arbitrary")),
    )(*operands)


def pallas_norm_pred(x, g, b, w, bias, bt):
    B, S, D = x.shape
    P = w.shape[1]                       # already padded to a multiple of 128
    return pl.pallas_call(
        norm_pred_kernel,
        out_shape=jax.ShapeDtypeStruct((B, S, P), jnp.bfloat16),
        grid=(B // bt,),
        in_specs=[pl.BlockSpec((bt, S, D), lambda i: (i, 0, 0)),
                  _const_spec((1, D)),
                  _const_spec((1, D)),
                  _const_spec((D, P)),
                  _const_spec((1, P))],
        out_specs=pl.BlockSpec((bt, S, P), lambda i: (i, 0, 0)),
        compiler_params=_compiler_params(("parallel",)),
    )(x, g, b, w, bias)


# ----------------------------------------------------------------------------
# Parameter preparation
# ----------------------------------------------------------------------------
def preprocess_params(params, num_heads):
    bf16 = jnp.bfloat16
    D = params["embed_w"].shape[1]
    dh = D // num_heads
    scale = dh ** -0.5

    P = params["pred_w"].shape[1]
    P_pad = int(pl.cdiv(P, 128) * 128)
    pred_w, pred_b = params["pred_w"], params["pred_b"]
    if P_pad != P:  # lane-dense pred head
        pred_w = jnp.pad(pred_w, ((0, 0), (0, P_pad - P)))
        pred_b = jnp.pad(pred_b, ((0, 0), (0, P_pad - P)))

    kp = {
        "embed_w": params["embed_w"].astype(bf16),
        "embed_b": params["embed_b"],
        "mask_token": params["mask_token"].astype(bf16),
        "pos_embed": params["pos_embed"],          # f32, fused add in-kernel
        "norm_g": params["norm_g"], "norm_b": params["norm_b"],
        "pred_w": pred_w.astype(bf16), "pred_b": pred_b,
        "pred_dim": int(P),
        "num_layers": len(params["blocks"]),
        "blocks": None,
    }

    if params["blocks"]:
        def stack(fn):
            return jnp.stack([fn(blk) for blk in params["blocks"]], axis=0)

        kp["blocks"] = {
            "ln1_g": stack(lambda b: b["ln1_g"]),
            "ln1_b": stack(lambda b: b["ln1_b"]),
            # split fused QKV into separate (D, D) weights; fold 1/sqrt(dh)
            # into the Q weights and bias.
            "wq": stack(lambda b: b["wqkv"][:, :D] * scale).astype(bf16),
            "wk": stack(lambda b: b["wqkv"][:, D:2 * D]).astype(bf16),
            "wv": stack(lambda b: b["wqkv"][:, 2 * D:]).astype(bf16),
            "bq": stack(lambda b: b["bqkv"][:, :D] * scale),
            "bk": stack(lambda b: b["bqkv"][:, D:2 * D]),
            "bv": stack(lambda b: b["bqkv"][:, 2 * D:]),
            "wo": stack(lambda b: b["wo"]).astype(bf16),
            "bo": stack(lambda b: b["bo"]),
            "ln2_g": stack(lambda b: b["ln2_g"]),
            "ln2_b": stack(lambda b: b["ln2_b"]),
            "w1": stack(lambda b: b["w1"]).astype(bf16),
            "b1": stack(lambda b: b["b1"]),
            "w2": stack(lambda b: b["w2"]).astype(bf16),
            "b2": stack(lambda b: b["b2"]),
        }
    return kp


# ----------------------------------------------------------------------------
# ViTDecoder forward (Pallas for compute, JAX for token shuffling glue)
# ----------------------------------------------------------------------------
def vit_decoder_forward(kparams, x, ids_to_restore, num_heads,
                        use_tanh_gelu=False):
    B = x.shape[0]
    D = kparams["embed_w"].shape[1]
    num_patches = ids_to_restore.shape[1]
    S = num_patches + 1
    L = kparams["num_layers"]
    Hm = kparams["blocks"]["w1"].shape[-1] if L else 4 * D
    bt = _pick_bt(B, S, D, Hm, num_heads)

    # decoder_embed (Pallas linear, bf16 output)
    x = pallas_linear(x, kparams["embed_w"], kparams["embed_b"], bt)

    # append mask tokens + unshuffle (pure data movement -> plain JAX glue)
    n_mask = num_patches + 1 - x.shape[1]
    mask_tokens = jnp.broadcast_to(kparams["mask_token"], (B, n_mask, D))
    x_ = jnp.concatenate([x[:, 1:, :], mask_tokens], axis=1)
    x_ = jnp.take_along_axis(
        x_, ids_to_restore[:, :, None].astype(jnp.int32), axis=1)
    x = jnp.concatenate([x[:, :1, :], x_], axis=1)              # (B, S, D)

    # fused transformer blocks (pos-embed add fused; residual f32 in VMEM)
    if L:
        x = pallas_decoder_blocks(x, kparams["pos_embed"], kparams["blocks"],
                                  num_heads, bt, use_tanh_gelu)
    else:
        x = (x.astype(jnp.float32) + kparams["pos_embed"]).astype(jnp.bfloat16)

    # final LayerNorm + prediction head; drop cls token + lane padding.
    x = pallas_norm_pred(x, kparams["norm_g"], kparams["norm_b"],
                         kparams["pred_w"], kparams["pred_b"], bt)
    return x[:, 1:, :kparams["pred_dim"]]          # bf16 (loss dtype)


# ----------------------------------------------------------------------------
# Pure-JAX reference (independent formulation, f32 math)
# ----------------------------------------------------------------------------
def _ref_layernorm(x, g, b):
    mu = jnp.mean(x, axis=-1, keepdims=True)
    var = jnp.mean((x - mu) ** 2, axis=-1, keepdims=True)
    return (x - mu) / jnp.sqrt(var + LN_EPS) * g + b


def _ref_block(x, blk, num_heads):
    B, S, D = x.shape
    dh = D // num_heads
    xn = _ref_layernorm(x, blk["ln1_g"], blk["ln1_b"])
    qkv = xn @ blk["wqkv"] + blk["bqkv"]
    q, k, v = jnp.split(qkv, 3, axis=-1)
    to_heads = lambda a: a.reshape(B, S, num_heads, dh).transpose(0, 2, 1, 3)
    q, k, v = map(to_heads, (q, k, v))
    s = jnp.einsum("bhqd,bhkd->bhqk", q, k) / jnp.sqrt(dh)
    p = jax.nn.softmax(s, axis=-1)
    o = jnp.einsum("bhqk,bhkd->bhqd", p, v)
    o = o.transpose(0, 2, 1, 3).reshape(B, S, D)
    x = x + o @ blk["wo"] + blk["bo"]
    xn2 = _ref_layernorm(x, blk["ln2_g"], blk["ln2_b"])
    h = jax.nn.gelu(xn2 @ blk["w1"] + blk["b1"], approximate=False)
    return x + h @ blk["w2"] + blk["b2"]


def ref_forward(params, x, ids_to_restore, num_heads):
    B, Lvis, _ = x.shape
    D = params["embed_w"].shape[1]
    num_patches = ids_to_restore.shape[1]
    x = x @ params["embed_w"] + params["embed_b"]
    mask_tokens = jnp.broadcast_to(
        params["mask_token"], (B, num_patches + 1 - Lvis, D))
    x_ = jnp.concatenate([x[:, 1:, :], mask_tokens], axis=1)
    x_ = jnp.take_along_axis(
        x_, ids_to_restore[:, :, None].astype(jnp.int32), axis=1)
    x = jnp.concatenate([x[:, :1, :], x_], axis=1)
    x = x + params["pos_embed"]
    for blk in params["blocks"]:
        x = _ref_block(x, blk, num_heads)
    x = _ref_layernorm(x, params["norm_g"], params["norm_b"])
    x = x @ params["pred_w"] + params["pred_b"]
    return x[:, 1:, :]


def quantize_params_like_kernel(params):
    """bf16-round the matmul weights (as the kernel does) but keep f32 math."""
    q = lambda w: w.astype(jnp.bfloat16).astype(jnp.float32)
    out = {k: v for k, v in params.items() if k != "blocks"}
    out["embed_w"] = q(params["embed_w"])
    out["mask_token"] = q(params["mask_token"])
    out["pred_w"] = q(params["pred_w"])
    out["blocks"] = [{**blk,
                      "wqkv": q(blk["wqkv"]), "wo": q(blk["wo"]),
                      "w1": q(blk["w1"]), "w2": q(blk["w2"])}
                     for blk in params["blocks"]]
    return out


# ----------------------------------------------------------------------------
# Deterministic parameter construction
# ----------------------------------------------------------------------------
def init_params(key, embedding_dim, decoder_embedding_dim, num_patches,
                in_channels, patch_size, num_layers, mlp_ratio):
    E, D = embedding_dim, decoder_embedding_dim
    S = num_patches + 1
    H = D * mlp_ratio
    P = patch_size[0] ** 2 * in_channels

    def nrm(k, shape, scale=0.05):
        return (scale * jax.random.normal(k, shape)).astype(jnp.float32)

    keys = iter(jax.random.split(key, 8 + 8 * num_layers))
    params = {
        "embed_w": nrm(next(keys), (E, D)),
        "embed_b": nrm(next(keys), (1, D), 0.02),
        "mask_token": nrm(next(keys), (1, 1, D), 0.02),
        "pos_embed": nrm(next(keys), (1, S, D), 0.02),
        "norm_g": jnp.ones((1, D), jnp.float32),
        "norm_b": jnp.zeros((1, D), jnp.float32),
        "pred_w": nrm(next(keys), (D, P)),
        "pred_b": nrm(next(keys), (1, P), 0.02),
        "blocks": [],
    }
    for _ in range(num_layers):
        params["blocks"].append({
            "ln1_g": jnp.ones((1, D), jnp.float32),
            "ln1_b": jnp.zeros((1, D), jnp.float32),
            "wqkv": nrm(next(keys), (D, 3 * D)),
            "bqkv": nrm(next(keys), (1, 3 * D), 0.02),
            "wo": nrm(next(keys), (D, D)),
            "bo": nrm(next(keys), (1, D), 0.02),
            "ln2_g": jnp.ones((1, D), jnp.float32),
            "ln2_b": jnp.zeros((1, D), jnp.float32),
            "w1": nrm(next(keys), (D, H)),
            "b1": nrm(next(keys), (1, H), 0.02),
            "w2": nrm(next(keys), (H, D)),
            "b2": nrm(next(keys), (1, D), 0.02),
        })
    return params


# ----------------------------------------------------------------------------
if __name__ == "__main__":
    # Small but structurally faithful shapes.
    B = 2
    embedding_dim = 32
    decoder_embedding_dim = 64
    num_patches = 16                 # 4x4 patch grid
    in_channels = 3
    patch_size = (4, 4)
    num_layers = 2
    num_heads = 4
    mlp_ratio = 4
    n_visible = 4                    # kept (unmasked) patches; +1 cls token

    key = jax.random.PRNGKey(0)
    k_par, k_x, k_ids = jax.random.split(key, 3)

    params = init_params(k_par, embedding_dim, decoder_embedding_dim,
                         num_patches, in_channels, patch_size,
                         num_layers, mlp_ratio)
    kparams = preprocess_params(params, num_heads)

    # Encoder output: (B, n_visible + 1, embedding_dim), includes cls token.
    x = jax.random.normal(k_x, (B, n_visible + 1, embedding_dim),
                          dtype=jnp.float32)
    # ids_to_restore: per-batch permutation of patch indices.
    ids_to_restore = jnp.stack([
        jax.random.permutation(jax.random.fold_in(k_ids, b), num_patches)
        for b in range(B)
    ]).astype(jnp.int32)

    out = vit_decoder_forward(kparams, x, ids_to_restore, num_heads)
    out = jax.block_until_ready(out)

    expected_shape = (B, num_patches, patch_size[0] ** 2 * in_channels)
    assert out.shape == expected_shape, (out.shape, expected_shape)

    # Reference with the same bf16-rounded weights (but f32 math) so the check
    # validates kernel correctness rather than the intentional bf16 cast.
    ref = jax.block_until_ready(
        ref_forward(quantize_params_like_kernel(params), x, ids_to_restore,
                    num_heads))
    out32 = out.astype(jnp.float32)
    max_err = float(jnp.max(jnp.abs(out32 - ref)))
    assert jnp.allclose(out32, ref, atol=2e-2, rtol=2e-2), max_err

    print("KERNEL_OK")
</pallas_src>

<mosaic_0001>
module attributes {stable_mosaic.version = 11 : i64} {
  func.func @_probe(%arg0: i32, %arg1: memref<8x128xf32, #tpu.memory_space<vmem>>, %arg2: memref<8x128xf32, #tpu.memory_space<vmem>>) attributes {dimension_semantics = [#tpu.dimension_semantics<arbitrary>], iteration_bounds = array<i64: 2>, scalar_prefetch = 0 : i64, scratch_operands = 0 : i64, tpu.core_type = #tpu.core_type<tc>, window_params = [{pipeline_mode = #tpu.pipeline_mode<synchronous>, transform_indices = @transform_0, window_bounds = array<i64: 8, 128>}, {pipeline_mode = #tpu.pipeline_mode<synchronous>, transform_indices = @transform_1, window_bounds = array<i64: 8, 128>}]} {
    %c0 = arith.constant 0 : index
    %c0_0 = arith.constant 0 : index
    %0 = vector.load %arg1[%c0, %c0_0] : memref<8x128xf32, #tpu.memory_space<vmem>>, vector<8x128xf32>
    %cst = arith.constant 1.000000e+00 : f32
    %1 = vector.broadcast %cst : f32 to vector<8x128xf32>
    %2 = arith.addf %0, %1 : vector<8x128xf32>
    %c0_1 = arith.constant 0 : index
    %c0_2 = arith.constant 0 : index
    %3 = vector.load %arg2[%c0_1, %c0_2] : memref<8x128xf32, #tpu.memory_space<vmem>>, vector<8x128xf32>
    tpu.vector_store %arg2[%c0_1, %c0_2], %2 {strides = array<i32>} : memref<8x128xf32, #tpu.memory_space<vmem>>, vector<8x128xf32>,
    return
  }
  func.func @transform_0(%arg0: i32) -> (i32, i32) {
    %c0_i32 = arith.constant 0 : i32
    %c0_i32_0 = arith.constant 0 : i32
    %c0_i32_1 = arith.constant 0 : i32
    return %c0_i32, %c0_i32_0 : i32, i32
  }
  func.func @transform_1(%arg0: i32) -> (i32, i32) {
    %c0_i32 = arith.constant 0 : i32
    %c0_i32_0 = arith.constant 0 : i32
    %c0_i32_1 = arith.constant 0 : i32
    return %c0_i32, %c0_i32_0 : i32, i32
  }
}

module attributes {stable_mosaic.version = 11 : i64} {
  func.func @linear_kernel(%arg0: i32, %arg1: memref<1x5x32xf32, #tpu.memory_space<vmem>>, %arg2: memref<32x64xbf16, #tpu.memory_space<vmem>>, %arg3: memref<1x64xf32, #tpu.memory_space<vmem>>, %arg4: memref<1x5x64xbf16, #tpu.memory_space<vmem>>) attributes {dimension_semantics = [#tpu.dimension_semantics<parallel>], iteration_bounds = array<i64: 2>, scalar_prefetch = 0 : i64, scratch_operands = 0 : i64, tpu.core_type = #tpu.core_type<tc>, window_params = [{transform_indices = @transform_0, window_bounds = array<i64: 1, 5, 32>}, {pipeline_mode = #tpu.pipeline_mode<synchronous>, transform_indices = @transform_1, window_bounds = array<i64: 32, 64>}, {pipeline_mode = #tpu.pipeline_mode<synchronous>, transform_indices = @transform_2, window_bounds = array<i64: 1, 64>}, {transform_indices = @transform_3, window_bounds = array<i64: 1, 5, 64>}]} {
    %c0 = arith.constant 0 : index
    %c0_0 = arith.constant 0 : index
    %c0_1 = arith.constant 0 : index
    %0 = vector.load %arg1[%c0, %c0_0, %c0_1] : memref<1x5x32xf32, #tpu.memory_space<vmem>>, vector<1x5x32xf32>
    %1 = arith.truncf %0 : vector<1x5x32xf32> to vector<1x5x32xbf16>
    %2 = vector.shape_cast %1 : vector<1x5x32xbf16> to vector<5x32xbf16>
    %c0_2 = arith.constant 0 : index
    %c0_3 = arith.constant 0 : index
    %3 = vector.load %arg2[%c0_2, %c0_3] : memref<32x64xbf16, #tpu.memory_space<vmem>>, vector<32x64xbf16>
    %cst = arith.constant dense<0.000000e+00> : vector<5x64xf32>
    %4 = tpu.matmul %2, %3, %cst {dimension_numbers = #tpu.dot_dimension_numbers<[1], [0], [0], [1], [0, 0, 1, 1], [], []>} : vector<5x32xbf16>, vector<32x64xbf16>, vector<5x64xf32> -> vector<5x64xf32>
    %c0_4 = arith.constant 0 : index
    %c0_5 = arith.constant 0 : index
    %5 = vector.load %arg3[%c0_4, %c0_5] : memref<1x64xf32, #tpu.memory_space<vmem>>, vector<1x64xf32>
    %6 = vector.broadcast %5 : vector<1x64xf32> to vector<5x64xf32>
    %7 = arith.addf %4, %6 : vector<5x64xf32>
    %8 = vector.shape_cast %7 : vector<5x64xf32> to vector<1x5x64xf32>
    %9 = arith.truncf %8 : vector<1x5x64xf32> to vector<1x5x64xbf16>
    %c0_6 = arith.constant 0 : index
    %c0_7 = arith.constant 0 : index
    %c0_8 = arith.constant 0 : index
    %10 = vector.load %arg4[%c0_6, %c0_7, %c0_8] : memref<1x5x64xbf16, #tpu.memory_space<vmem>>, vector<1x5x64xbf16>
    tpu.vector_store %arg4[%c0_6, %c0_7, %c0_8], %9 {strides = array<i32>} : memref<1x5x64xbf16, #tpu.memory_space<vmem>>, vector<1x5x64xbf16>,
    return
  }
  func.func @transform_0(%arg0: i32) -> (i32, i32, i32) {
    %c0_i32 = arith.constant 0 : i32
    %c0_i32_0 = arith.constant 0 : i32
    %c0_i32_1 = arith.constant 0 : i32
    return %arg0, %c0_i32, %c0_i32_0 : i32, i32, i32
  }
  func.func @transform_1(%arg0: i32) -> (i32, i32) {
    %c0_i32 = arith.constant 0 : i32
    %c0_i32_0 = arith.constant 0 : i32
    %c0_i32_1 = arith.constant 0 : i32
    return %c0_i32, %c0_i32_0 : i32, i32
  }
  func.func @transform_2(%arg0: i32) -> (i32, i32) {
    %c0_i32 = arith.constant 0 : i32
    %c0_i32_0 = arith.constant 0 : i32
    %c0_i32_1 = arith.constant 0 : i32
    return %c0_i32, %c0_i32_0 : i32, i32
  }
  func.func @transform_3(%arg0: i32) -> (i32, i32, i32) {
    %c0_i32 = arith.constant 0 : i32
    %c0_i32_0 = arith.constant 0 : i32
    %c0_i32_1 = arith.constant 0 : i32
    return %arg0, %c0_i32, %c0_i32_0 : i32, i32, i32
  }
}

</mosaic_0001>

<bundles_post_ra>
// kernel: tpu_custom_call.1
= control target key start
LH: loop header
LB: loop body
LE: loop exit
PB: predicated region body
PF: predicated region fallthrough
CT: control target
= control target key end

     0   :  { %6 = vsyncpa [#allocation3], 0  ;;  %s305_s0 = inlined_call_operand.hbm [shape: f32[8,128], index: 0, kind: input, shape index: {}]   ;;  %s306_s1 = inlined_call_operand.hbm [shape: f32[8,128], index: 1, kind: output, shape index: {}]  }
   0x1   :  { %7 = vsyncpa [#allocation4], 0  ;;  %s258_s6 = smov 0  }
   0x2 LB: > { %s145_s7 = sadd.s32 4294967295, %s244_s6   ;;  %p146_p0 = scmp.ge.s32.totalorder %s244_s6, 1  ;;  %s244_s6 = sphi %s258_s6, %s13_s6  }
   0x3   : > { %p60_p1 = scmp.lt.s32.totalorder %s244_s6, 3  ;;  %p270_p3 = scmp.eq.s32.totalorder %s145_s7, 0 }
   0x4   : > { %s246_s10 = smov [#allocation2]  }
   0x5   : > { %p266_p2 = pnand %p146_p0, %p60_p1  ;;  %s73_s11 = sshll.u32 %s246_s10, 4  ;;  %s74_s11 = int_to_ptr.vmem [resolvable:$true] %s73_s11 }
   0x6   : > { %s191_s12 = scalar_lea.vmem %s74_s11, 128  ;;  %p199_p10 = scmp.lt.s32.totalorder %s74_s11, %s74_s11 }
   0x7   : > { %p162_p4 = pneg %p266_p2  ;;  %p192_p7 = scmp.ne.s32.totalorder %s74_s11, %s191_s12 }
   0x8   : > { %p200_p11 = scmp.lt.s32.totalorder %s191_s12, %s191_s12 }
   0x9   : > { %p163_p5 = pnand %p270_p3, %p162_p4 }
   0xa   : > { %p201_p12 = por %p200_p11, %p199_p10 }
   0xb   : > { %p182_p6 = pneg %p163_p5 }
   0xd   : > { %p194_p8 = pnand %p192_p7, %p182_p6 }
   0xf   : > { %p195_p9 = pneg %p194_p8 }
  0x11   : > { %p202_p13 = pnand %p201_p12, %p195_p9 }
  0x13   : > { %205 = shalt.err (!%p202_p13)
}
  0x14   : > { %165 = dma.hbm_to_vmem [thread:$0]  (!%p163_p5), %s305_s0, 128, %s74_s11, [#allocation3]  }
  0x15   : > { %86 = sbr.rel (%p266_p2) target bundleno = 42 (0x2a), region = 24 }
  0x1a   : > { %235 = dma.done.wait (%p270_p3), [#allocation3], 128  }
  0x1b   : > { %237 = vsyncadd (%p270_p3), [#allocation3], 4294967168  ;;  %s247_s15 = smov [#allocation5]   ;;  %v96_v0 = vld [vmem:[#allocation2] sm:$0xff]  ;;  %p287_p0 = scmp.eq.s32.totalorder %s145_s7, 1 }
  0x1c   : > { %s106_s16 = sshll.u32 %s247_s15, 4  ;;  %v97_v1 = vadd.f32 1.0, %v96_v0  ;;  %s107_s16 = int_to_ptr.vmem [resolvable:$true] %s106_s16 }
  0x1d   : > { %s206_s18 = scalar_lea.vmem %s107_s16, 128  ;;  %p213_p5 = scmp.lt.s32.totalorder %s107_s16, %s107_s16 }
  0x1e   : > { %98 = vst [vmem:[#allocation5] sm:$0xff] %v97_v1  ;;  %p207_p1 = scmp.ne.s32.totalorder %s107_s16, %s206_s18  ;;  %p214_p6 = scmp.lt.s32.totalorder %s206_s18, %s206_s18 }
  0x20   : > { %p208_p2 = pnand %p207_p1, %p287_p0  ;;  %p215_p7 = por %p214_p6, %p213_p5 }
  0x22   : > { %p209_p4 = pneg %p208_p2 }
  0x24   : > { %p216_p3 = pnand %p215_p7, %p209_p4 }
  0x26   : > { %219 = shalt.err (!%p216_p3)
}
  0x27   : > { %159 = dma.vmem_to_hbm [thread:$0]  (%p287_p0), %s107_s16, 128, %s306_s1, [#allocation4]  }
  0x28   : > { %239 = dma.done.wait (%p287_p0), [#allocation4], 128  }
  0x29   : > { %241 = vsyncadd (%p287_p0), [#allocation4], 4294967168 }
  0x2a PF: > { %s13_s6 = sadd.s32 1, %s244_s6  }
  0x2b   : > { %p10_p8 = scmp.ge.s32.totalorder %s13_s6, 4  }
  0x2d   :  { %12 = sbr.rel (!%p10_p8) target bundleno = 2 (0x2), region = 53 }
  0x32   :  { %119 = vsyncpa [#allocation3], 1 }
  0x33   :  { %121 = vsyncpa [#allocation3 + $0x1], 1 }
  0x34   :  { %122 = vsyncpa [#allocation4], 1 }
  0x35   :  { %124 = vsyncpa [#allocation4 + $0x1], 1 }

// kernel: tpu_custom_call.1
= control target key start
LH: loop header
LB: loop body
LE: loop exit
PB: predicated region body
PF: predicated region fallthrough
CT: control target
= control target key end

     0   :  { %s362_s12 = smov 0   ;;  %s388_s0 = inlined_call_operand.vmem [shape: f32[2,5,32], index: 0, kind: input, shape index: {}]   ;;  %s389_s1 = inlined_call_operand.vmem [shape: bf16[32,64], index: 1, kind: input, shape index: {}]   ;;  %s390_s2 = inlined_call_operand.vmem [shape: f32[1,64], index: 2, kind: input, shape index: {}]   ;;  %s391_s3 = inlined_call_operand.vmem [shape: bf16[2,5,64], index: 3, kind: output, shape index: {}]  }
   0x1 LB: > { %s296_s13 = sadd.s32 4294967295, %s338_s12   ;;  %p300_p0 = scmp.ge.s32.totalorder %s338_s12, 1  ;;  %s338_s12 = sphi %s362_s12, %s13_s12  }
   0x2   : > { %p136_p1 = scmp.lt.s32.totalorder %s338_s12, 3 }
   0x4   : > { %p137_p2 = pnand %p300_p0, %p136_p1 }
   0x5   : > { %p158_p3 = scmp.lt.s32.totalorder (!%p137_p2), %s296_s13, 1 }
   0x6   : > { %140 = sbr.rel (%p137_p2) target bundleno = 219 (0xdb), region = 32 }
   0xb   : > { %v330_v0 = vld [vmem:[%s389_s1 + $0x8] sm:$0xff]   ;;  %v340_v1 = vmov 0.0   ;;  %v331_v2 = vld [vmem:[%s389_s1] sm:$0xff]   ;;  %vm341_vm0 = vmmov 0   ;;  %s393_s13 = smov (!%p158_p3, %s296_s13), 1  ;;  %vm192_vm1 = vcmask 261120  }
   0xc   : > { %312 = vmatprep.subr.bf16.mxu0 %v340_v1  ;;  %316 = vmatprep.mubr.msk.bf16.mxu0 %vm341_vm0, %v340_v1  ;;  %s301_s18 = sshll.u32 %s393_s13, 3  ;;  %s302_s22 = sshll.u32 %s393_s13, 2  ;;  %v303_v5 = vld [vmem:[%s390_s2] ss:$0 sm:$0xff]  ;;  %vm237_vm2 = vcmask 518144  }
   0xd   : > { %313 = vmatpush3.bf16.msra.mxu0 %v330_v0  ;;  %s161_s21 = scalar_lea.vmem %s388_s0, %s301_s18  ;;  %s165_s27 = scalar_lea.vmem %s391_s3, %s302_s22  ;;  %vm238_vm3 = vsmask.f32 2304 }
   0xe   : > { %314 = vmatprep.subr.bf16.mxu0 %v340_v1  ;;  %v167_v3 = vld [vmem:[%s161_s21] sm:$0x1f]  ;;  %vm239_vm4 = vmand %vm237_vm2, %vm238_vm3 }
   0xf   : > { %v168_v4 = vpack.c.bf16 %v167_v3, %v167_v3  ;;  %v240_v8 = vld [vmem:[%s165_s27] sm:$0x7] }
  0x11   : > { %315 = vmatpush3.bf16.msra.mxu0 %v331_v2 }
  0x14   : > { %317 = vmatmul.mubr.msk.bf16.vlgmr.msra.gmra.mxu0 %vm192_vm1, %v168_v4 }
  0xd4   : > { %v230_v6 = vpop.f32.mrf.mxu0 }
  0xd5   : > { %v231_v7 = vadd.f32 %v303_v5, %v230_v6 }
  0xd6   : > { %v318_v9 = vpop.f32.mrf.mxu0 }
  0xd7   : > { %v236_v10 = vpack.c.bf16 %v231_v7, %v231_v7 }
  0xd8   : > { %v233_v11 = vpop.f32.mrf.mxu0 }
  0xd9   : > { %v241_v12 = vsel %vm239_vm4, %v236_v10, %v240_v8 }
  0xda   : > { %242 = vst [vmem:[%s165_s27] sm:$0x7] %v241_v12  ;;  %v319_v13 = vpop.f32.mrf.mxu0 }
  0xdb PF: > { %s13_s12 = sadd.s32 1, %s338_s12  }
  0xdc   : > { %p10_p4 = scmp.ge.s32.totalorder %s13_s12, 4  }
  0xde   :  { %12 = sbr.rel (!%p10_p4) target bundleno = 1 (0x1), region = 62 }

</bundles_post_ra>
